<compile_context>
chip_gen: v6e
topology: v6e:2x2x1
jax: 0.10.0
libtpu: 0.0.40
codegen_flags: <defaults>
</compile_context>

<pallas_src>
import jax
import jax.numpy as jnp
from jax.experimental import pallas as pl
from jax.experimental.pallas import tpu as pltpu

_LANE = 128
_SUBLANE = 8


def fc_relu_kernel(x_ref, w_ref, b_ref, o_ref):
    # MXU matmul with f32 accumulation; bias-add + ReLU on the VPU in f32.
    y = jnp.dot(x_ref[...], w_ref[...], preferred_element_type=jnp.float32)
    y = y + b_ref[...]                       # (1, N_pad) broadcasts over rows
    o_ref[...] = jnp.maximum(y, 0.0).astype(o_ref.dtype)


def _round_up(n, m):
    return ((n + m - 1) // m) * m


def fc_encoder_forward(x, w, b, *, compute_dtype=jnp.bfloat16, tb=128):
    """FC_Encoder forward: relu(x @ W.T + b).

    x: (B, 784) f32, w: (out, 784) f32 (PyTorch nn.Linear layout), b: (out,) f32.
    Returns (B, out) f32.
    """
    B, D_in = x.shape
    D_out = w.shape[0]

    # Lane-dense padded dims (feedback items 1 & 2).
    K_pad = _round_up(D_in, _LANE)    # 784 -> 896
    N_pad = _round_up(D_out, _LANE)   # 32  -> 128

    # Batch tile: 128 when the batch is big enough, else a single sublane-aligned tile.
    if B >= tb:
        tb_eff = tb
    else:
        tb_eff = _round_up(max(B, 1), _SUBLANE)
    B_pad = _round_up(B, tb_eff)

    # Host-side zero padding + optional bf16 cast for the matmul operands.
    xp = jnp.zeros((B_pad, K_pad), compute_dtype).at[:B, :D_in].set(
        x.astype(compute_dtype))
    wtp = jnp.zeros((K_pad, N_pad), compute_dtype).at[:D_in, :D_out].set(
        w.T.astype(compute_dtype))
    bp = jnp.zeros((1, N_pad), jnp.float32).at[0, :D_out].set(
        b.astype(jnp.float32))

    grid = (B_pad // tb_eff,)

    out_padded = pl.pallas_call(
        fc_relu_kernel,
        out_shape=jax.ShapeDtypeStruct((B_pad, N_pad), jnp.float32),
        grid=grid,
        in_specs=[
            pl.BlockSpec((tb_eff, K_pad), lambda i: (i, 0)),   # x tile per step
            pl.BlockSpec((K_pad, N_pad), lambda i: (0, 0)),    # weights resident
            pl.BlockSpec((1, N_pad), lambda i: (0, 0)),        # bias resident
        ],
        out_specs=pl.BlockSpec((tb_eff, N_pad), lambda i: (i, 0)),
        compiler_params=pltpu.CompilerParams(
            dimension_semantics=("parallel",)),                # v7x: shard batch over 2 TCs
    )(xp, wtp, bp)

    return out_padded[:B, :D_out]


if __name__ == "__main__":
    key = jax.random.PRNGKey(0)
    k_x, k_w, k_b = jax.random.split(key, 3)

    B = 256            # large enough to give a real batch grid (grid=(2,) at tb=128)
    D_in = 784         # fixed by the module (28*28 flattened MNIST)
    output_size = 32   # module hyperparameter

    x = jax.random.normal(k_x, (B, D_in), dtype=jnp.float32)

    # Deterministic init mimicking nn.Linear's uniform(-1/sqrt(in), 1/sqrt(in)).
    bound = 1.0 / jnp.sqrt(jnp.float32(D_in))
    w = jax.random.uniform(k_w, (output_size, D_in), minval=-bound, maxval=bound,
                           dtype=jnp.float32)        # PyTorch layout (out, in)
    b = jax.random.uniform(k_b, (output_size,), minval=-bound, maxval=bound,
                           dtype=jnp.float32)

    # Plain-JAX reference.
    ref = jnp.maximum(x @ w.T + b, 0.0)

    # Exact-semantics f32 path.
    out_f32 = jax.block_until_ready(
        fc_encoder_forward(x, w, b, compute_dtype=jnp.float32))
    assert out_f32.shape == (B, output_size)
    assert jnp.allclose(out_f32, ref, atol=1e-4, rtol=1e-4)

    # bf16 fast path (f32 accumulate): bf16-level tolerance vs. the f32 reference.
    out_bf16 = jax.block_until_ready(
        fc_encoder_forward(x, w, b, compute_dtype=jnp.bfloat16))
    assert out_bf16.shape == (B, output_size)
    assert jnp.allclose(out_bf16, ref, atol=3e-2, rtol=3e-2)

    print("KERNEL_OK")
</pallas_src>

<mosaic_0001>
module attributes {stable_mosaic.version = 11 : i64} {
  func.func @fc_relu_kernel(%arg0: i32, %arg1: memref<128x896xf32, #tpu.memory_space<vmem>>, %arg2: memref<896x128xf32, #tpu.memory_space<vmem>>, %arg3: memref<1x128xf32, #tpu.memory_space<vmem>>, %arg4: memref<128x128xf32, #tpu.memory_space<vmem>>) attributes {dimension_semantics = [#tpu.dimension_semantics<parallel>], iteration_bounds = array<i64: 2>, scalar_prefetch = 0 : i64, scratch_operands = 0 : i64, tpu.core_type = #tpu.core_type<tc>, window_params = [{transform_indices = @transform_0, window_bounds = array<i64: 128, 896>}, {pipeline_mode = #tpu.pipeline_mode<synchronous>, transform_indices = @transform_1, window_bounds = array<i64: 896, 128>}, {pipeline_mode = #tpu.pipeline_mode<synchronous>, transform_indices = @transform_2, window_bounds = array<i64: 1, 128>}, {transform_indices = @transform_3, window_bounds = array<i64: 128, 128>}]} {
    %c0 = arith.constant 0 : index
    %c0_0 = arith.constant 0 : index
    %0 = vector.load %arg1[%c0, %c0_0] : memref<128x896xf32, #tpu.memory_space<vmem>>, vector<128x896xf32>
    %c0_1 = arith.constant 0 : index
    %c0_2 = arith.constant 0 : index
    %1 = vector.load %arg2[%c0_1, %c0_2] : memref<896x128xf32, #tpu.memory_space<vmem>>, vector<896x128xf32>
    %cst = arith.constant dense<0.000000e+00> : vector<128x128xf32>
    %2 = tpu.matmul %0, %1, %cst {dimension_numbers = #tpu.dot_dimension_numbers<[1], [0], [0], [1], [0, 0, 1, 1], [], []>} : vector<128x896xf32>, vector<896x128xf32>, vector<128x128xf32> -> vector<128x128xf32>
    %c0_3 = arith.constant 0 : index
    %c0_4 = arith.constant 0 : index
    %3 = vector.load %arg3[%c0_3, %c0_4] : memref<1x128xf32, #tpu.memory_space<vmem>>, vector<1x128xf32>
    %4 = vector.broadcast %3 : vector<1x128xf32> to vector<128x128xf32>
    %5 = arith.addf %2, %4 : vector<128x128xf32>
    %cst_5 = arith.constant 0.000000e+00 : f32
    %6 = vector.broadcast %cst_5 : f32 to vector<128x128xf32>
    %7 = arith.maximumf %5, %6 : vector<128x128xf32>
    %c0_6 = arith.constant 0 : index
    %c0_7 = arith.constant 0 : index
    %8 = vector.load %arg4[%c0_6, %c0_7] : memref<128x128xf32, #tpu.memory_space<vmem>>, vector<128x128xf32>
    tpu.vector_store %arg4[%c0_6, %c0_7], %7 {strides = array<i32>} : memref<128x128xf32, #tpu.memory_space<vmem>>, vector<128x128xf32>,
    return
  }
  func.func @transform_0(%arg0: i32) -> (i32, i32) {
    %c0_i32 = arith.constant 0 : i32
    %c0_i32_0 = arith.constant 0 : i32
    return %arg0, %c0_i32 : i32, i32
  }
  func.func @transform_1(%arg0: i32) -> (i32, i32) {
    %c0_i32 = arith.constant 0 : i32
    %c0_i32_0 = arith.constant 0 : i32
    %c0_i32_1 = arith.constant 0 : i32
    return %c0_i32, %c0_i32_0 : i32, i32
  }
  func.func @transform_2(%arg0: i32) -> (i32, i32) {
    %c0_i32 = arith.constant 0 : i32
    %c0_i32_0 = arith.constant 0 : i32
    %c0_i32_1 = arith.constant 0 : i32
    return %c0_i32, %c0_i32_0 : i32, i32
  }
  func.func @transform_3(%arg0: i32) -> (i32, i32) {
    %c0_i32 = arith.constant 0 : i32
    %c0_i32_0 = arith.constant 0 : i32
    return %arg0, %c0_i32 : i32, i32
  }
}

</mosaic_0001>

<bundles_post_ra>
// kernel: tpu_custom_call.1
= control target key start
LH: loop header
LB: loop body
LE: loop exit
PB: predicated region body
PF: predicated region fallthrough
CT: control target
= control target key end

     0   :  { %8 = vsyncpa [#allocation3], 0  ;;  %s2217_s0 = inlined_call_operand.hbm [shape: f32[256,896], index: 0, kind: input, shape index: {}]   ;;  %s2218_s1 = inlined_call_operand.hbm [shape: f32[896,128], index: 1, kind: input, shape index: {}]   ;;  %s2219_s2 = inlined_call_operand.vmem [shape: f32[1,128], index: 2, kind: input, shape index: {}]   ;;  %s2220_s3 = inlined_call_operand.hbm [shape: f32[256,128], index: 3, kind: output, shape index: {}]  }
   0x1   :  { %10 = vsyncpa [#allocation3 + $0x1], 0 }
   0x2   :  { %11 = vsyncpa [#allocation6], 0 }
   0x3   :  { %12 = vsyncpa [#allocation4], 0 }
   0x4   :  { %14 = vsyncpa [#allocation4 + $0x1], 0  ;;  %s1711_s12 = smov 0   ;;  %s1713_s13 = smov 0  }
   0x5   :  { %s1715_s14 = smov 0   ;;  %s1717_s15 = smov 0  }
   0x6 LB: > { %s1732_s16 = sadd.s32 4294967295, %s1680_s15   ;;  %s1147_s17 = sadd.s32 4294967294, %s1680_s15   ;;  %s1680_s15 = sphi %s1717_s15, %s2264_s15   ;;  %s1676_s14 = sphi %s1715_s14, %s2263_s14   ;;  %s1672_s13 = sphi %s1713_s13, %s2262_s13   ;;  %s1668_s12 = sphi %s1711_s12, %s2261_s12  }
   0x7   : > { %p40_p0 = scmp.ne.s32.totalorder %s1672_s13, %s1668_s12  ;;  %p2221_p1 = scmp.eq.s32.totalorder %s1732_s16, 0 }
   0x8   : > { %p112_p3 = scmp.eq.s32.totalorder %s1147_s17, 1  ;;  %p1148_p5 = scmp.ge.s32.totalorder %s1680_s15, 1 }
   0x9   : > { %p1741_p4 = por %p2221_p1, %p40_p0  ;;  %p119_p7 = scmp.lt.s32.totalorder %s1680_s15, 3 }
   0xa   : > { %p1746_p6 = por %p112_p3, %p40_p0  ;;  %s1682_s21 = smov [#allocation5]  }
   0xb   : > { %s2225_s18 = scalar_select %p1741_p4, 1, 0 }
   0xc   : > { %s2226_s19 = scalar_select %p1746_p6, 1, 0 }
   0xd   : > { %p1751_p8 = pnand %p1148_p5, %p119_p7  ;;  %s131_s22 = sshll.u32 %s1682_s21, 4  ;;  %s132_s22 = int_to_ptr.vmem [resolvable:$true] %s131_s22 }
   0xe   : > { %s1765_s24 = sadd.s32 1, %s1680_s15   ;;  %s27_s25 = sadd.s32 1, %s1676_s14 }
   0xf   : > { %s2227_s20 = scalar_select %p1751_p8, 1, 0 }
  0x10   : > { %p1503_p9 = pneg %p1751_p8  ;;  %s24_s26 = ssub.s32 %s1680_s15, %s1765_s24 }
  0x11   : > { %s1569_s27 = scalar_lea.vmem %s132_s22, 14336  ;;  %p1577_p5 = scmp.lt.s32.totalorder %s132_s22, %s132_s22 }
  0x12   : > { %p1760_p11 = pnand %p1503_p9, %p2221_p1  ;;  %p1570_p13 = scmp.ne.s32.totalorder %s132_s22, %s1569_s27 }
  0x13   : > { %p1578_p7 = scmp.lt.s32.totalorder %s1569_s27, %s1569_s27 }
  0x14   : > { %p1560_p12 = pneg %p1760_p11 }
  0x15   : > { %p1579_p10 = por %p1578_p7, %p1577_p5 }
  0x16   : > { %p1572_p0 = pnand %p1570_p13, %p1560_p12 }
  0x18   : > { %p1573_p3 = pneg %p1572_p0 }
  0x1a   : > { %p1580_p2 = pnand %p1579_p10, %p1573_p3 }
  0x1c   : > { %1583 = shalt.err (!%p1580_p2)
}
  0x1d   : > { %s1683_s28 = smov 128   ;;  %s1684_s29 = smov 8  }
  0x1e   : > { %1506 = dma.hbm_to_vmem [thread:$0]  (!%p1760_p11), %s2218_s1, 14336, %s132_s22, [#allocation6], %s1683_s28, %s1683_s28, %s1684_s29  }
  0x1f   : > { %p25_p9 = scmp.eq.s32.totalorder %s24_s26, 0  ;;  %p34_p12 = scmp.ne.s32.totalorder %s1676_s14, %s1672_s13 }
  0x20   : > { %p35_p10 = scmp.eq.s32.totalorder %s1680_s15, 0  ;;  %p1516_p2 = scmp.lt.s32.totalorder %s1680_s15, 2 }
  0x21   : > { %s1782_s5 = scalar_select %p25_p9, %s1676_s14, %s27_s25  }
  0x22   : > { %p36_p13 = por %p35_p10, %p34_p12  ;;  %p2229_p0 = scmp.eq.s32.totalorder %s1732_s16, 1 }
  0x23   : > { %s148_s7 = sand.u32 1, %s1676_s14   ;;  %s1493_s8 = smul.u32 14336, %s1680_s15 }
  0x24   : > { %p1786_p3 = por %p2229_p0, %p34_p12  ;;  %s1492_s9 = smul.u32 896, %s148_s7 }
  0x25   : > { %s1795_s17 = scalar_lea.hbm %s2217_s0, %s1493_s8  ;;  %p1797_p11 = pnand %p1516_p2, %p36_p13 }
  0x26   : > { %s2230_s6 = scalar_select %p1786_p3, 1, 0 }
  0x27   : > { %s152_s22 = scalar_lea.vmem [#allocation2], %s1492_s9  ;;  %s1803_s25 = scalar_lea.sflag [#allocation3], %s148_s7 }
  0x28   : > { %s160_s23 = sshll.u32 %s152_s22, 4  ;;  %s1584_s26 = scalar_lea.hbm %s1795_s17, 14336  ;;  %s1801_s23 = int_to_ptr.vmem [resolvable:$true] %s160_s23 }
  0x29   : > { %p1585_p5 = scmp.ne.s32.totalorder %s1795_s17, %s1584_s26  ;;  %p1586_p7 = pneg %p1797_p11 }
  0x2a   : > { %s1589_s29 = scalar_lea.hbm %s2217_s0, 28672  ;;  %p1590_p10 = scmp.lt.s32.totalorder %s1795_s17, %s2217_s0 }
  0x2b   : > { %p1587_p9 = pnand %p1586_p7, %p1585_p5  ;;  %p1591_p2 = scmp.lt.s32.totalorder %s1589_s29, %s1584_s26 }
  0x2d   : > { %p1588_p12 = pneg %p1587_p9  ;;  %p1592_p13 = por %p1591_p2, %p1590_p10 }
  0x2f   : > { %p1593_p0 = pnand %p1592_p13, %p1588_p12 }
  0x31   : > { %1596 = shalt.err (!%p1593_p0)
}
  0x32   : > { %s1597_s7 = scalar_lea.vmem %s1801_s23, 14336  ;;  %s1685_s8 = smov [#allocation2]  }
  0x33   : > { %p1598_p1 = scmp.ne.s32.totalorder %s1801_s23, %s1597_s7  ;;  %s1602_s9 = sshll.u32 %s1685_s8, 4  ;;  %s1603_s9 = int_to_ptr.vmem [resolvable:$false] %s1602_s9 }
  0x34   : > { %s1604_s10 = scalar_lea.vmem %s1603_s9, 28672  ;;  %p1605_p9 = scmp.lt.s32.totalorder %s1801_s23, %s1603_s9 }
  0x35   : > { %p1600_p6 = pnand %p1598_p1, %p1586_p7  ;;  %p1606_p3 = scmp.lt.s32.totalorder %s1604_s10, %s1597_s7 }
  0x37   : > { %p1601_p5 = pneg %p1600_p6  ;;  %p1607_p4 = por %p1606_p3, %p1605_p9 }
  0x39   : > { %p1608_p8 = pnand %p1607_p4, %p1601_p5 }
  0x3b   : > { %1611 = shalt.err (!%p1608_p8)
}
  0x3c   : > { %s1686_s11 = smov 896   ;;  %s1687_s22 = smov 56  }
  0x3d   : > { %1510 = dma.hbm_to_vmem [thread:$0]  (!%p1797_p11), %s1795_s17, 14336, %s1801_s23, %s1803_s25, %s1686_s11, %s1686_s11, %s1687_s22  }
  0x3e   : > { %p2232_p1 = scmp.ne.s32.totalorder %s2227_s20, 0 }
  0x40   : > { %172 = sbr.rel (%p2232_p1) target bundleno = 452 (0x1c4), region = 32 }
  0x45   : > { %s1827_s26 = sand.u32 1, %s1672_s13   ;;  %p2233_p4 = scmp.ne.s32.totalorder %s2225_s18, 0 }
  0x46   : > { %s1494_s27 = smul.u32 896, %s1827_s26  ;;  %s175_s28 = scalar_lea.sflag [#allocation3], %s1827_s26 }
  0x48   : > { %s1831_s29 = scalar_lea.vmem [#allocation2], %s1494_s27 }
  0x49   : > { %1655 = dma.done.wait (%p2233_p4), %s175_s28, 14336  }
  0x4a   : > { %1657 = vsyncadd (%p2233_p4), %s175_s28, 4294952960  ;;  %p2234_p6 = scmp.eq.s32.totalorder %s1732_s16, 0 }
  0x4c   : > { %1659 = dma.done.wait (%p2234_p6), [#allocation6], 14336   ;;  %p2235_p8 = pmov %p2234_p6 }
  0x4d   : > { %v350_v0 = vld [vmem:[#allocation5 + $0xf8] sm:$0xff]  ;;  %v349_v2 = vld [vmem:[#allocation5 + $0xf0] sm:$0xff]  ;;  %v348_v6 = vld [vmem:[#allocation5 + $0xe8] sm:$0xff]  ;;  %s1156_s17 = sshll.u32 %s1827_s26, 7  ;;  %s1163_s23 = sshll.u32 %s1732_s16, 11 }
  0x4e   : > { %1661 = vsyncadd (%p2235_p8), [#allocation6], 4294952960  ;;  %v334_v1 = vld [vmem:[#allocation5 + $0x78] sm:$0xff]  ;;  %1164 = vmatprep.subr.mxu0 %v350_v0  ;;  %v333_v4 = vld [vmem:[#allocation5 + $0x70] sm:$0xff]  ;;  %s2091_s21 = scalar_lea.vmem [#allocation7], %s1156_s17  ;;  %s2171_s7 = scalar_lea.hbm %s2220_s3, %s1163_s23 }
  0x4f   : > { %v382_v3 = vld [vmem:[#allocation5 + $0x1f8] sm:$0xff]  ;;  %1165 = vmatpush3.msra.mxu0 %v334_v1  ;;  %v381_v7 = vld [vmem:[#allocation5 + $0x1f0] sm:$0xff]  ;;  %v332_v8 = vld [vmem:[#allocation5 + $0x68] sm:$0xff]  ;;  %s1064_s25 = sshll.u32 %s2091_s21, 4  ;;  %s1051_s8 = scalar_lea.sflag [#allocation4], %s1827_s26  ;;  %s2173_s25 = int_to_ptr.vmem [resolvable:$true] %s1064_s25 }
  0x50   : > { %v366_v5 = vld [vmem:[#allocation5 + $0x178] sm:$0xff]  ;;  %1244 = vmatprep.subr.mxu1 %v382_v3  ;;  %1166 = vmatprep.subr.mxu0 %v349_v2  ;;  %v365_v9 = vld [vmem:[#allocation5 + $0x170] sm:$0xff]  ;;  %v380_v10 = vld [vmem:[#allocation5 + $0x1e8] sm:$0xff]  ;;  %s1612_s9 = scalar_lea.vmem %s2173_s25, 2048  ;;  %p2258_p11 = scmp.ne.s32.totalorder %s2230_s6, 0 }
  0x51   : > { %1245 = vmatpush3.msra.mxu1 %v366_v5  ;;  %1167 = vmatpush3.msra.mxu0 %v333_v4  ;;  %v347_v11 = vld [vmem:[#allocation5 + $0xe0] sm:$0xff]  ;;  %v364_v12 = vld [vmem:[#allocation5 + $0x168] sm:$0xff]  ;;  %v346_v15 = vld [vmem:[#allocation5 + $0xd8] sm:$0xff]  ;;  %p1613_p3 = scmp.ne.s32.totalorder %s2173_s25, %s1612_s9  ;;  %s1688_s16 = smov [#allocation7]  }
  0x52   : > { %1246 = vmatprep.subr.mxu1 %v381_v7  ;;  %1168 = vmatprep.subr.mxu0 %v348_v6  ;;  %v331_v13 = vld [vmem:[#allocation5 + $0x60] sm:$0xff]  ;;  %v330_v17 = vld [vmem:[#allocation5 + $0x58] sm:$0xff]  ;;  %v345_v19 = vld [vmem:[#allocation5 + $0xd0] sm:$0xff]  ;;  %s1616_s10 = sshll.u32 %s1688_s16, 4  ;;  %s1617_s10 = int_to_ptr.vmem [resolvable:$false] %s1616_s10 }
  0x53   : > { %1247 = vmatpush3.msra.mxu1 %v365_v9  ;;  %v379_v14 = vld [vmem:[#allocation5 + $0x1e0] sm:$0xff]  ;;  %1169 = vmatpush3.msra.mxu0 %v332_v8  ;;  %v378_v18 = vld [vmem:[#allocation5 + $0x1d8] sm:$0xff]  ;;  %v329_v21 = vld [vmem:[#allocation5 + $0x50] sm:$0xff]  ;;  %p1614_p7 = pnand %p1613_p3, %p2258_p11  ;;  %s1618_s11 = scalar_lea.vmem %s1617_s10, 4096 }
  0x54   : > { %1248 = vmatprep.subr.mxu1 %v380_v10  ;;  %v363_v16 = vld [vmem:[#allocation5 + $0x160] sm:$0xff]  ;;  %1170 = vmatprep.subr.mxu0 %v347_v11  ;;  %v362_v20 = vld [vmem:[#allocation5 + $0x158] sm:$0xff]  ;;  %v377_v22 = vld [vmem:[#allocation5 + $0x1d0] sm:$0xff]  ;;  %p1619_p10 = scmp.lt.s32.totalorder %s2173_s25, %s1617_s10  ;;  %p1620_p2 = scmp.lt.s32.totalorder %s1618_s11, %s1612_s9 }
  0x55   : > { %1249 = vmatpush3.msra.mxu1 %v364_v12  ;;  %1171 = vmatpush3.msra.mxu0 %v331_v13  ;;  %v344_v23 = vld [vmem:[#allocation5 + $0xc8] sm:$0xff]  ;;  %v361_v24 = vld [vmem:[#allocation5 + $0x150] sm:$0xff]  ;;  %v343_v27 = vld [vmem:[#allocation5 + $0xc0] sm:$0xff]  ;;  %p1615_p12 = pneg %p1614_p7 }
  0x56   : > { %1250 = vmatprep.subr.mxu1 %v379_v14  ;;  %1172 = vmatprep.subr.mxu0 %v346_v15  ;;  %v328_v25 = vld [vmem:[#allocation5 + $0x48] sm:$0xff]  ;;  %v327_v29 = vld [vmem:[#allocation5 + $0x40] sm:$0xff]  ;;  %v342_v31 = vld [vmem:[#allocation5 + $0xb8] sm:$0xff]  ;;  %p1621_p13 = por %p1620_p2, %p1619_p10 }
  0x57   : > { %1251 = vmatpush3.msra.mxu1 %v363_v16  ;;  %1173 = vmatpush3.msra.mxu0 %v330_v17  ;;  %v376_v26 = vld [vmem:[#allocation5 + $0x1c8] sm:$0xff]  ;;  %v375_v30 = vld [vmem:[#allocation5 + $0x1c0] sm:$0xff]  ;;  %v326_v33 = vld [vmem:[#allocation5 + $0x38] sm:$0xff] }
  0x58   : > { %1252 = vmatprep.subr.mxu1 %v378_v18  ;;  %1174 = vmatprep.subr.mxu0 %v345_v19  ;;  %v360_v28 = vld [vmem:[#allocation5 + $0x148] sm:$0xff]  ;;  %v359_v32 = vld [vmem:[#allocation5 + $0x140] sm:$0xff]  ;;  %v374_v34 = vld [vmem:[#allocation5 + $0x1b8] sm:$0xff]  ;;  %p1622_p0 = pnand %p1621_p13, %p1615_p12 }
  0x59   : > { %1253 = vmatpush3.msra.mxu1 %v362_v20  ;;  %1175 = vmatpush3.msra.mxu0 %v329_v21  ;;  %v341_v35 = vld [vmem:[#allocation5 + $0xb0] sm:$0xff]  ;;  %v358_v36 = vld [vmem:[#allocation5 + $0x138] sm:$0xff]  ;;  %v340_v39 = vld [vmem:[#allocation5 + $0xa8] sm:$0xff] }
  0x5a   : > { %1254 = vmatprep.subr.mxu1 %v377_v22  ;;  %1176 = vmatprep.subr.mxu0 %v344_v23  ;;  %v325_v37 = vld [vmem:[#allocation5 + $0x30] sm:$0xff]  ;;  %v324_v41 = vld [vmem:[#allocation5 + $0x28] sm:$0xff]  ;;  %v339_v43 = vld [vmem:[#allocation5 + $0xa0] sm:$0xff] }
  0x5b   : > { %1255 = vmatpush3.msra.mxu1 %v361_v24  ;;  %1177 = vmatpush3.msra.mxu0 %v328_v25  ;;  %v373_v38 = vld [vmem:[#allocation5 + $0x1b0] sm:$0xff]  ;;  %v372_v42 = vld [vmem:[#allocation5 + $0x1a8] sm:$0xff]  ;;  %v323_v45 = vld [vmem:[#allocation5 + $0x20] sm:$0xff] }
  0x5c   : > { %1256 = vmatprep.subr.mxu1 %v376_v26  ;;  %1178 = vmatprep.subr.mxu0 %v343_v27  ;;  %v357_v40 = vld [vmem:[#allocation5 + $0x130] sm:$0xff]  ;;  %v356_v44 = vld [vmem:[#allocation5 + $0x128] sm:$0xff]  ;;  %v371_v46 = vld [vmem:[#allocation5 + $0x1a0] sm:$0xff] }
  0x5d   : > { %1257 = vmatpush3.msra.mxu1 %v360_v28  ;;  %1179 = vmatpush3.msra.mxu0 %v327_v29  ;;  %v338_v47 = vld [vmem:[#allocation5 + $0x98] sm:$0xff]  ;;  %v355_v48 = vld [vmem:[#allocation5 + $0x120] sm:$0xff]  ;;  %v337_v51 = vld [vmem:[#allocation5 + $0x90] sm:$0xff] }
  0x5e   : > { %1258 = vmatprep.subr.mxu1 %v375_v30  ;;  %1180 = vmatprep.subr.mxu0 %v342_v31  ;;  %v322_v49 = vld [vmem:[#allocation5 + $0x18] sm:$0xff]  ;;  %v321_v53 = vld [vmem:[#allocation5 + $0x10] sm:$0xff]  ;;  %v336_v55 = vld [vmem:[#allocation5 + $0x88] sm:$0xff] }
  0x5f   : > { %1259 = vmatpush3.msra.mxu1 %v359_v32  ;;  %1181 = vmatpush3.msra.mxu0 %v326_v33  ;;  %v370_v50 = vld [vmem:[#allocation5 + $0x198] sm:$0xff]  ;;  %v369_v54 = vld [vmem:[#allocation5 + $0x190] sm:$0xff]  ;;  %v320_v57 = vld [vmem:[#allocation5 + $0x8] sm:$0xff] }
  0x60   : > { %1260 = vmatprep.subr.mxu1 %v374_v34  ;;  %1182 = vmatprep.subr.mxu0 %v341_v35  ;;  %v354_v52 = vld [vmem:[#allocation5 + $0x118] sm:$0xff]  ;;  %v353_v56 = vld [vmem:[#allocation5 + $0x110] sm:$0xff]  ;;  %v368_v58 = vld [vmem:[#allocation5 + $0x188] sm:$0xff] }
  0x61   : > { %1261 = vmatpush3.msra.mxu1 %v358_v36  ;;  %1183 = vmatpush3.msra.mxu0 %v325_v37  ;;  %v335_v59 = vld [vmem:[#allocation5 + $0x80] sm:$0xff]  ;;  %v208_v60 = vld [vmem:[%s1831_s29 + $0x8] sm:$0xff]  ;;  %v414_v1 = vld [vmem:[#allocation5 + $0x2f8] sm:$0xff] }
  0x62   : > { %1262 = vmatprep.subr.mxu1 %v373_v38  ;;  %1184 = vmatprep.subr.mxu0 %v340_v39  ;;  %v319_v61 = vld [vmem:[#allocation5] sm:$0xff]  ;;  %v352_v62 = vld [vmem:[#allocation5 + $0x108] sm:$0xff]  ;;  %v210_v3 = vld [vmem:[%s1831_s29 + $0x18] sm:$0xff] }
  0x63   : > { %1263 = vmatpush3.msra.mxu1 %v357_v40  ;;  %1185 = vmatpush3.msra.mxu0 %v324_v41  ;;  %v207_v63 = vld [vmem:[%s1831_s29] sm:$0xff]  ;;  %v398_v4 = vld [vmem:[#allocation5 + $0x278] sm:$0xff]  ;;  %v209_v5 = vld [vmem:[%s1831_s29 + $0x10] sm:$0xff] }
  0x64   : > { %1264 = vmatprep.subr.mxu1 %v372_v42  ;;  %1186 = vmatprep.subr.mxu0 %v339_v43  ;;  %v367_v0 = vld [vmem:[#allocation5 + $0x180] sm:$0xff]  ;;  %v214_v7 = vld [vmem:[%s1831_s29 + $0x38] sm:$0xff]  ;;  %v413_v8 = vld [vmem:[#allocation5 + $0x2f0] sm:$0xff] }
  0x65   : > { %1265 = vmatpush3.msra.mxu1 %v356_v44  ;;  %1187 = vmatpush3.msra.mxu0 %v323_v45  ;;  %v351_v2 = vld [vmem:[#allocation5 + $0x100] sm:$0xff]  ;;  %v217_v9 = vld [vmem:[%s1831_s29 + $0x50] sm:$0xff]  ;;  %v222_v11 = vld [vmem:[%s1831_s29 + $0x78] sm:$0xff] }
  0x66   : > { %1266 = vmatprep.subr.mxu1 %v371_v46  ;;  %1188 = vmatprep.subr.mxu0 %v338_v47  ;;  %v215_v6 = vld [vmem:[%s1831_s29 + $0x40] sm:$0xff]  ;;  %v397_v10 = vld [vmem:[#allocation5 + $0x270] sm:$0xff]  ;;  %v412_v12 = vld [vmem:[#allocation5 + $0x2e8] sm:$0xff] }
  0x67   : > { %1267 = vmatpush3.msra.mxu1 %v355_v48  ;;  %1189 = vmatpush3.msra.mxu0 %v322_v49  ;;  %v216_v13 = vld [vmem:[%s1831_s29 + $0x48] sm:$0xff]  ;;  %v221_v15 = vld [vmem:[%s1831_s29 + $0x70] sm:$0xff]  ;;  %v411_v18 = vld [vmem:[#allocation5 + $0x2e0] sm:$0xff] }
  0x68   : > { %1268 = vmatprep.subr.mxu1 %v370_v50  ;;  %1190 = vmatprep.subr.mxu0 %v337_v51  ;;  %v396_v14 = vld [vmem:[#allocation5 + $0x268] sm:$0xff]  ;;  %v229_v17 = vld [vmem:[%s1831_s29 + $0xb0] sm:$0xff]  ;;  %v395_v19 = vld [vmem:[#allocation5 + $0x260] sm:$0xff] }
  0x69   : > { %1269 = vmatpush3.msra.mxu1 %v354_v52  ;;  %1191 = vmatpush3.msra.mxu0 %v321_v53  ;;  %v224_v16 = vld [vmem:[%s1831_s29 + $0x88] sm:$0xff]  ;;  %v430_v20 = vld [vmem:[#allocation5 + $0x378] sm:$0xff]  ;;  %v223_v21 = vld [vmem:[%s1831_s29 + $0x80] sm:$0xff] }
  0x6a   : > { %1270 = vmatprep.subr.mxu1 %v369_v54  ;;  %1192 = vmatprep.subr.mxu0 %v336_v55  ;;  %v410_v22 = vld [vmem:[#allocation5 + $0x2d8] sm:$0xff]  ;;  %v228_v23 = vld [vmem:[%s1831_s29 + $0xa8] sm:$0xff]  ;;  %v231_v24 = vld [vmem:[%s1831_s29 + $0xc0] sm:$0xff] }
  0x6b   : > { %1271 = vmatpush3.msra.mxu1 %v353_v56  ;;  %1193 = vmatpush3.msra.mxu0 %v320_v57  ;;  %v236_v25 = vld [vmem:[%s1831_s29 + $0xe8] sm:$0xff]  ;;  %v394_v26 = vld [vmem:[#allocation5 + $0x258] sm:$0xff]  ;;  %v409_v27 = vld [vmem:[#allocation5 + $0x2d0] sm:$0xff] }
  0x6c   : > { %1272 = vmatprep.subr.mxu1 %v368_v58  ;;  %1194 = vmatprep.subr.mxu0 %v335_v59  ;;  %v230_v28 = vld [vmem:[%s1831_s29 + $0xb8] sm:$0xff]  ;;  %v393_v29 = vld [vmem:[#allocation5 + $0x250] sm:$0xff]  ;;  %v235_v30 = vld [vmem:[%s1831_s29 + $0xe0] sm:$0xff] }
  0x6d   : > { %502 = vmatprep.mubr.f32.mxu0 %v208_v60  ;;  %1195 = vmatpush3.msra.mxu0 %v319_v61  ;;  %v238_v31 = vld [vmem:[%s1831_s29 + $0xf8] sm:$0xff]  ;;  %v243_v32 = vld [vmem:[%s1831_s29 + $0x120] sm:$0xff]  ;;  %v408_v33 = vld [vmem:[#allocation5 + $0x2c8] sm:$0xff] }
  0x6e   : > { %1273 = vmatpush3.msra.mxu1 %v352_v62  ;;  %503 = vmatmul.mubr.f32.vlgmr.msra.gmra.mxu0 %v207_v63  ;;  %v392_v34 = vld [vmem:[#allocation5 + $0x248] sm:$0xff]  ;;  %v429_v35 = vld [vmem:[#allocation5 + $0x370] sm:$0xff]  ;;  %v407_v37 = vld [vmem:[#allocation5 + $0x2c0] sm:$0xff] }
  0x6f   : > { %1274 = vmatprep.subr.mxu1 %v367_v0  ;;  %1324 = vmatprep.subr.mxu0 %v414_v1  ;;  %v237_v36 = vld [vmem:[%s1831_s29 + $0xf0] sm:$0xff]  ;;  %v242_v38 = vld [vmem:[%s1831_s29 + $0x118] sm:$0xff]  ;;  %v391_v41 = vld [vmem:[#allocation5 + $0x240] sm:$0xff] }
  0x70   : > { %1275 = vmatpush3.msra.mxu1 %v351_v2  ;;  %647 = vmatprep.mubr.f32.mxu1 %v210_v3  ;;  %v245_v39 = vld [vmem:[%s1831_s29 + $0x130] sm:$0xff]  ;;  %v250_v40 = vld [vmem:[%s1831_s29 + $0x158] sm:$0xff]  ;;  %v244_v43 = vld [vmem:[%s1831_s29 + $0x128] sm:$0xff] }
  0x71   : > { %1325 = vmatpush3.msra.mxu0 %v398_v4  ;;  %648 = vmatmul.mubr.f32.vlgmr.msra.gmra.mxu1 %v209_v5  ;;  %v406_v42 = vld [vmem:[#allocation5 + $0x2b8] sm:$0xff]  ;;  %v249_v45 = vld [vmem:[%s1831_s29 + $0x150] sm:$0xff]  ;;  %v252_v46 = vld [vmem:[%s1831_s29 + $0x168] sm:$0xff] }
  0x72   : > { %507 = vmatprep.mubr.f32.mxu0 %v215_v6  ;;  %1326 = vmatprep.subr.mxu0 %v413_v8  ;;  %v390_v44 = vld [vmem:[#allocation5 + $0x238] sm:$0xff]  ;;  %v257_v47 = vld [vmem:[%s1831_s29 + $0x190] sm:$0xff]  ;;  %v428_v50 = vld [vmem:[#allocation5 + $0x368] sm:$0xff] }
  0x73   : > { %508 = vmatmul.mubr.f32.gmra.mxu0 %v214_v7  ;;  %652 = vmatprep.mubr.f32.mxu1 %v217_v9  ;;  %v405_v48 = vld [vmem:[#allocation5 + $0x2b0] sm:$0xff]  ;;  %v251_v51 = vld [vmem:[%s1831_s29 + $0x160] sm:$0xff]  ;;  %v404_v52 = vld [vmem:[#allocation5 + $0x2a8] sm:$0xff] }
  0x74   : > { %1327 = vmatpush3.msra.mxu0 %v397_v10  ;;  %512 = vmatprep.mubr.f32.mxu0 %v222_v11  ;;  %v389_v49 = vld [vmem:[#allocation5 + $0x230] sm:$0xff]  ;;  %v256_v53 = vld [vmem:[%s1831_s29 + $0x188] sm:$0xff]  ;;  %v259_v54 = vld [vmem:[%s1831_s29 + $0x1a0] sm:$0xff] }
  0x75   : > { %1328 = vmatprep.subr.mxu0 %v412_v12  ;;  %653 = vmatmul.mubr.f32.gmra.mxu1 %v216_v13  ;;  %v264_v55 = vld [vmem:[%s1831_s29 + $0x1c8] sm:$0xff]  ;;  %v403_v57 = vld [vmem:[#allocation5 + $0x2a0] sm:$0xff]  ;;  %v258_v58 = vld [vmem:[%s1831_s29 + $0x198] sm:$0xff] }
  0x76   : > { %1329 = vmatpush3.msra.mxu0 %v396_v14  ;;  %657 = vmatprep.mubr.f32.mxu1 %v224_v16  ;;  %v388_v56 = vld [vmem:[#allocation5 + $0x228] sm:$0xff]  ;;  %v427_v59 = vld [vmem:[#allocation5 + $0x360] sm:$0xff]  ;;  %v266_v61 = vld [vmem:[%s1831_s29 + $0x1d8] sm:$0xff] }
  0x77   : > { %513 = vmatmul.mubr.f32.gmra.mxu0 %v221_v15  ;;  %1330 = vmatprep.subr.mxu0 %v411_v18  ;;  %v263_v60 = vld [vmem:[%s1831_s29 + $0x1c0] sm:$0xff]  ;;  %v426_v63 = vld [vmem:[#allocation5 + $0x358] sm:$0xff]  ;;  %v265_v1 = vld [vmem:[%s1831_s29 + $0x1d0] sm:$0xff] }
  0x78   : > { %517 = vmatprep.mubr.f32.mxu0 %v229_v17  ;;  %1331 = vmatpush3.msra.mxu0 %v395_v19  ;;  %v271_v62 = vld [vmem:[%s1831_s29 + $0x200] sm:$0xff]  ;;  %v402_v2 = vld [vmem:[#allocation5 + $0x298] sm:$0xff]  ;;  %v273_v4 = vld [vmem:[%s1831_s29 + $0x210] sm:$0xff] }
  0x79   : > { %1436 = vmatprep.subr.mxu1 %v430_v20  ;;  %658 = vmatmul.mubr.f32.gmra.mxu1 %v223_v21  ;;  %v387_v0 = vld [vmem:[#allocation5 + $0x220] sm:$0xff]  ;;  %v270_v3 = vld [vmem:[%s1831_s29 + $0x1f8] sm:$0xff]  ;;  %v425_v6 = vld [vmem:[#allocation5 + $0x350] sm:$0xff] }
  0x7a   : > { %1332 = vmatprep.subr.mxu0 %v410_v22  ;;  %662 = vmatprep.mubr.f32.mxu1 %v231_v24  ;;  %v278_v5 = vld [vmem:[%s1831_s29 + $0x238] sm:$0xff]  ;;  %v272_v8 = vld [vmem:[%s1831_s29 + $0x208] sm:$0xff]  ;;  %v401_v9 = vld [vmem:[#allocation5 + $0x290] sm:$0xff] }
  0x7b   : > { %518 = vmatmul.mubr.f32.gmra.mxu0 %v228_v23  ;;  %1437 = vmatpush3.msra.mxu1 %v430_v20  ;;  %v386_v7 = vld [vmem:[#allocation5 + $0x218] sm:$0xff]  ;;  %v277_v10 = vld [vmem:[%s1831_s29 + $0x230] sm:$0xff]  ;;  %v280_v11 = vld [vmem:[%s1831_s29 + $0x248] sm:$0xff] }
  0x7c   : > { %522 = vmatprep.mubr.f32.mxu0 %v236_v25  ;;  %1333 = vmatpush3.msra.mxu0 %v394_v26  ;;  %v285_v12 = vld [vmem:[%s1831_s29 + $0x270] sm:$0xff]  ;;  %v424_v13 = vld [vmem:[#allocation5 + $0x348] sm:$0xff]  ;;  %v279_v15 = vld [vmem:[%s1831_s29 + $0x240] sm:$0xff] }
  0x7d   : > { %1334 = vmatprep.subr.mxu0 %v409_v27  ;;  %663 = vmatmul.mubr.f32.gmra.mxu1 %v230_v28  ;;  %v385_v14 = vld [vmem:[#allocation5 + $0x210] sm:$0xff]  ;;  %v400_v16 = vld [vmem:[#allocation5 + $0x288] sm:$0xff]  ;;  %v287_v18 = vld [vmem:[%s1831_s29 + $0x280] sm:$0xff] }
  0x7e   : > { %1335 = vmatpush3.msra.mxu0 %v393_v29  ;;  %667 = vmatprep.mubr.f32.mxu1 %v238_v31  ;;  %v284_v17 = vld [vmem:[%s1831_s29 + $0x268] sm:$0xff]  ;;  %v423_v20 = vld [vmem:[#allocation5 + $0x340] sm:$0xff]  ;;  %v286_v22 = vld [vmem:[%s1831_s29 + $0x278] sm:$0xff] }
  0x7f   : > { %523 = vmatmul.mubr.f32.gmra.mxu0 %v235_v30  ;;  %1336 = vmatprep.subr.mxu0 %v408_v33  ;;  %v292_v19 = vld [vmem:[%s1831_s29 + $0x2a8] sm:$0xff]  ;;  %v399_v23 = vld [vmem:[#allocation5 + $0x280] sm:$0xff]  ;;  %v294_v25 = vld [vmem:[%s1831_s29 + $0x2b8] sm:$0xff] }
  0x80   : > { %527 = vmatprep.mubr.f32.mxu0 %v243_v32  ;;  %1337 = vmatpush3.msra.mxu0 %v392_v34  ;;  %v384_v21 = vld [vmem:[#allocation5 + $0x208] sm:$0xff]  ;;  %v291_v24 = vld [vmem:[%s1831_s29 + $0x2a0] sm:$0xff]  ;;  %v422_v27 = vld [vmem:[#allocation5 + $0x338] sm:$0xff] }
  0x81   : > { %1438 = vmatprep.subr.mxu1 %v429_v35  ;;  %668 = vmatmul.mubr.f32.gmra.mxu1 %v237_v36  ;;  %v299_v26 = vld [vmem:[%s1831_s29 + $0x2e0] sm:$0xff]  ;;  %v293_v29 = vld [vmem:[%s1831_s29 + $0x2b0] sm:$0xff]  ;;  %v298_v30 = vld [vmem:[%s1831_s29 + $0x2d8] sm:$0xff] }
  0x82   : > { %1338 = vmatprep.subr.mxu0 %v407_v37  ;;  %672 = vmatprep.mubr.f32.mxu1 %v245_v39  ;;  %v383_v28 = vld [vmem:[#allocation5 + $0x200] sm:$0xff]  ;;  %v301_v31 = vld [vmem:[%s1831_s29 + $0x2f0] sm:$0xff]  ;;  %v306_v32 = vld [vmem:[%s1831_s29 + $0x318] sm:$0xff] }
  0x83   : > { %528 = vmatmul.mubr.f32.gmra.mxu0 %v242_v38  ;;  %1439 = vmatpush3.msra.mxu1 %v429_v35  ;;  %v421_v33 = vld [vmem:[#allocation5 + $0x330] sm:$0xff]  ;;  %v300_v34 = vld [vmem:[%s1831_s29 + $0x2e8] sm:$0xff]  ;;  %v307_v39 = vld [vmem:[%s1831_s29 + $0x320] sm:$0xff] }
  0x84   : > { %532 = vmatprep.mubr.f32.mxu0 %v250_v40  ;;  %1339 = vmatpush3.msra.mxu0 %v391_v41  ;;  %v305_v35 = vld [vmem:[%s1831_s29 + $0x310] sm:$0xff]  ;;  %v420_v36 = vld [vmem:[#allocation5 + $0x328] sm:$0xff]  ;;  %v419_v40 = vld [vmem:[#allocation5 + $0x320] sm:$0xff] }
  0x85   : > { %1340 = vmatprep.subr.mxu0 %v406_v42  ;;  %673 = vmatmul.mubr.f32.gmra.mxu1 %v244_v43  ;;  %v308_v37 = vld [vmem:[%s1831_s29 + $0x328] sm:$0xff]  ;;  %v313_v38 = vld [vmem:[%s1831_s29 + $0x350] sm:$0xff]  ;;  %v418_v42 = vld [vmem:[#allocation5 + $0x318] sm:$0xff] }
  0x86   : > { %1341 = vmatpush3.msra.mxu0 %v390_v44  ;;  %677 = vmatprep.mubr.f32.mxu1 %v252_v46  ;;  %v312_v41 = vld [vmem:[%s1831_s29 + $0x348] sm:$0xff]  ;;  %v315_v43 = vld [vmem:[%s1831_s29 + $0x360] sm:$0xff]  ;;  %v417_v46 = vld [vmem:[#allocation5 + $0x310] sm:$0xff] }
  0x87   : > { %533 = vmatmul.mubr.f32.gmra.mxu0 %v249_v45  ;;  %1342 = vmatprep.subr.mxu0 %v405_v48  ;;  %v212_v44 = vld [vmem:[%s1831_s29 + $0x28] sm:$0xff]  ;;  %v314_v45 = vld [vmem:[%s1831_s29 + $0x358] sm:$0xff] }
  0x88   : > { %537 = vmatprep.mubr.f32.mxu0 %v257_v47  ;;  %1343 = vmatpush3.msra.mxu0 %v389_v49  ;;  %v211_v47 = vld [vmem:[%s1831_s29 + $0x20] sm:$0xff]  ;;  %v416_v48 = vld [vmem:[#allocation5 + $0x308] sm:$0xff] }
  0x89   : > { %1440 = vmatprep.subr.mxu1 %v428_v50  ;;  %678 = vmatmul.mubr.f32.gmra.mxu1 %v251_v51  ;;  %v219_v49 = vld [vmem:[%s1831_s29 + $0x60] sm:$0xff] }
  0x8a   : > { %1344 = vmatprep.subr.mxu0 %v404_v52  ;;  %682 = vmatprep.mubr.f32.mxu1 %v259_v54  ;;  %v415_v51 = vld [vmem:[#allocation5 + $0x300] sm:$0xff]  ;;  %v218_v52 = vld [vmem:[%s1831_s29 + $0x58] sm:$0xff] }
  0x8b   : > { %538 = vmatmul.mubr.f32.gmra.mxu0 %v256_v53  ;;  %1441 = vmatpush3.msra.mxu1 %v428_v50  ;;  %v213_v50 = vld [vmem:[%s1831_s29 + $0x30] sm:$0xff]  ;;  %v220_v53 = vld [vmem:[%s1831_s29 + $0x68] sm:$0xff]  ;;  %v226_v54 = vld [vmem:[%s1831_s29 + $0x98] sm:$0xff] }
  0x8c   : > { %542 = vmatprep.mubr.f32.mxu0 %v264_v55  ;;  %1345 = vmatpush3.msra.mxu0 %v388_v56  ;;  %v227_v55 = vld [vmem:[%s1831_s29 + $0xa0] sm:$0xff]  ;;  %v225_v56 = vld [vmem:[%s1831_s29 + $0x90] sm:$0xff] }
  0x8d   : > { %1346 = vmatprep.subr.mxu0 %v403_v57  ;;  %683 = vmatmul.mubr.f32.gmra.mxu1 %v258_v58  ;;  %v233_v57 = vld [vmem:[%s1831_s29 + $0xd0] sm:$0xff]  ;;  %v234_v58 = vld [vmem:[%s1831_s29 + $0xd8] sm:$0xff] }
  0x8e   : > { %1442 = vmatprep.subr.mxu1 %v427_v59  ;;  %687 = vmatprep.mubr.f32.mxu1 %v266_v61  ;;  %v240_v61 = vld [vmem:[%s1831_s29 + $0x108] sm:$0xff] }
  0x8f   : > { %543 = vmatmul.mubr.f32.gmra.mxu0 %v263_v60  ;;  %1443 = vmatpush3.msra.mxu1 %v427_v59  ;;  %v241_v59 = vld [vmem:[%s1831_s29 + $0x110] sm:$0xff]  ;;  %v232_v60 = vld [vmem:[%s1831_s29 + $0xc8] sm:$0xff] }
  0x90   : > { %547 = vmatprep.mubr.f32.mxu0 %v271_v62  ;;  %1444 = vmatprep.subr.mxu1 %v426_v63  ;;  %v248_v62 = vld [vmem:[%s1831_s29 + $0x148] sm:$0xff] }
  0x91   : > { %1347 = vmatpush3.msra.mxu0 %v387_v0  ;;  %688 = vmatmul.mubr.f32.gmra.mxu1 %v265_v1  ;;  %v239_v0 = vld [vmem:[%s1831_s29 + $0x100] sm:$0xff] }
  0x92   : > { %1348 = vmatprep.subr.mxu0 %v402_v2  ;;  %692 = vmatprep.mubr.f32.mxu1 %v273_v4  ;;  %v247_v1 = vld [vmem:[%s1831_s29 + $0x140] sm:$0xff]  ;;  %v262_v2 = vld [vmem:[%s1831_s29 + $0x1b8] sm:$0xff] }
  0x93   : > { %548 = vmatmul.mubr.f32.gmra.mxu0 %v270_v3  ;;  %1445 = vmatpush3.msra.mxu1 %v426_v63  ;;  %v255_v63 = vld [vmem:[%s1831_s29 + $0x180] sm:$0xff]  ;;  %v269_v3 = vld [vmem:[%s1831_s29 + $0x1f0] sm:$0xff]  ;;  %v246_v4 = vld [vmem:[%s1831_s29 + $0x138] sm:$0xff] }
  0x94   : > { %552 = vmatprep.mubr.f32.mxu0 %v278_v5  ;;  %1446 = vmatprep.subr.mxu1 %v425_v6  ;;  %v254_v5 = vld [vmem:[%s1831_s29 + $0x178] sm:$0xff] }
  0x95   : > { %1349 = vmatpush3.msra.mxu0 %v386_v7  ;;  %693 = vmatmul.mubr.f32.gmra.mxu1 %v272_v8  ;;  %v283_v7 = vld [vmem:[%s1831_s29 + $0x260] sm:$0xff]  ;;  %v253_v8 = vld [vmem:[%s1831_s29 + $0x170] sm:$0xff] }
  0x96   : > { %1350 = vmatprep.subr.mxu0 %v401_v9  ;;  %697 = vmatprep.mubr.f32.mxu1 %v280_v11  ;;  %v261_v9 = vld [vmem:[%s1831_s29 + $0x1b0] sm:$0xff] }
  0x97   : > { %553 = vmatmul.mubr.f32.gmra.mxu0 %v277_v10  ;;  %1447 = vmatpush3.msra.mxu1 %v425_v6  ;;  %v276_v6 = vld [vmem:[%s1831_s29 + $0x228] sm:$0xff]  ;;  %v290_v10 = vld [vmem:[%s1831_s29 + $0x298] sm:$0xff]  ;;  %v297_v11 = vld [vmem:[%s1831_s29 + $0x2d0] sm:$0xff] }
  0x98   : > { %557 = vmatprep.mubr.f32.mxu0 %v285_v12  ;;  %1448 = vmatprep.subr.mxu1 %v424_v13  ;;  %v260_v12 = vld [vmem:[%s1831_s29 + $0x1a8] sm:$0xff] }
  0x99   : > { %1351 = vmatpush3.msra.mxu0 %v385_v14  ;;  %698 = vmatmul.mubr.f32.gmra.mxu1 %v279_v15  ;;  %v304_v14 = vld [vmem:[%s1831_s29 + $0x308] sm:$0xff]  ;;  %v311_v15 = vld [vmem:[%s1831_s29 + $0x340] sm:$0xff] }
  0x9a   : > { %1352 = vmatprep.subr.mxu0 %v400_v16  ;;  %702 = vmatprep.mubr.f32.mxu1 %v287_v18  ;;  %v267_v16 = vld [vmem:[%s1831_s29 + $0x1e0] sm:$0xff]  ;;  %v318_v18 = vld [vmem:[%s1831_s29 + $0x378] sm:$0xff] }
  0x9b   : > { %558 = vmatmul.mubr.f32.gmra.mxu0 %v284_v17  ;;  %1449 = vmatpush3.msra.mxu1 %v424_v13  ;;  %v268_v13 = vld [vmem:[%s1831_s29 + $0x1e8] sm:$0xff]  ;;  %v275_v17 = vld [vmem:[%s1831_s29 + $0x220] sm:$0xff] }
  0x9c   : > { %562 = vmatprep.mubr.f32.mxu0 %v292_v19  ;;  %1450 = vmatprep.subr.mxu1 %v423_v20  ;;  %v274_v19 = vld [vmem:[%s1831_s29 + $0x218] sm:$0xff] }
  0x9d   : > { %1353 = vmatpush3.msra.mxu0 %v384_v21  ;;  %703 = vmatmul.mubr.f32.gmra.mxu1 %v286_v22  ;;  %v281_v21 = vld [vmem:[%s1831_s29 + $0x250] sm:$0xff] }
  0x9e   : > { %1354 = vmatprep.subr.mxu0 %v399_v23  ;;  %707 = vmatprep.mubr.f32.mxu1 %v294_v25  ;;  %v289_v22 = vld [vmem:[%s1831_s29 + $0x290] sm:$0xff]  ;;  %v288_v23 = vld [vmem:[%s1831_s29 + $0x288] sm:$0xff]  ;;  %v295_v25 = vld [vmem:[%s1831_s29 + $0x2c0] sm:$0xff] }
  0x9f   : > { %563 = vmatmul.mubr.f32.gmra.mxu0 %v291_v24  ;;  %1451 = vmatpush3.msra.mxu1 %v423_v20  ;;  %v282_v20 = vld [vmem:[%s1831_s29 + $0x258] sm:$0xff]  ;;  %v296_v24 = vld [vmem:[%s1831_s29 + $0x2c8] sm:$0xff] }
  0xa0   : > { %567 = vmatprep.mubr.f32.mxu0 %v299_v26  ;;  %1452 = vmatprep.subr.mxu1 %v422_v27  ;;  %v303_v26 = vld [vmem:[%s1831_s29 + $0x300] sm:$0xff] }
  0xa1   : > { %1355 = vmatpush3.msra.mxu0 %v383_v28  ;;  %708 = vmatmul.mubr.f32.gmra.mxu1 %v293_v29  ;;  %v310_v28 = vld [vmem:[%s1831_s29 + $0x338] sm:$0xff]  ;;  %v309_v29 = vld [vmem:[%s1831_s29 + $0x330] sm:$0xff] }
  0xa2   : > { %712 = vmatprep.mubr.f32.mxu1 %v301_v31  ;;  %1453 = vmatpush3.msra.mxu1 %v422_v27  ;;  %v302_v27 = vld [vmem:[%s1831_s29 + $0x2f8] sm:$0xff]  ;;  %v316_v31 = vld [vmem:[%s1831_s29 + $0x368] sm:$0xff] }
  0xa3   : > { %568 = vmatmul.mubr.f32.gmra.mxu0 %v298_v30  ;;  %1454 = vmatprep.subr.mxu1 %v421_v33  ;;  %v317_v30 = vld [vmem:[%s1831_s29 + $0x370] sm:$0xff] }
  0xa4   : > { %572 = vmatprep.mubr.f32.mxu0 %v306_v32  ;;  %1455 = vmatpush3.msra.mxu1 %v421_v33 }
  0xa5   : > { %713 = vmatmul.mubr.f32.gmra.mxu1 %v300_v34  ;;  %1456 = vmatprep.subr.mxu1 %v420_v36 }
  0xa6   : > { %717 = vmatprep.mubr.f32.mxu1 %v308_v37  ;;  %1457 = vmatpush3.msra.mxu1 %v420_v36 }
  0xa7   : > { %573 = vmatmul.mubr.f32.gmra.mxu0 %v305_v35  ;;  %1458 = vmatprep.subr.mxu1 %v419_v40 }
  0xa8   : > { %577 = vmatprep.mubr.f32.mxu0 %v313_v38  ;;  %1459 = vmatpush3.msra.mxu1 %v419_v40 }
  0xa9   : > { %718 = vmatmul.mubr.f32.gmra.mxu1 %v307_v39  ;;  %1460 = vmatprep.subr.mxu1 %v418_v42 }
  0xaa   : > { %722 = vmatprep.mubr.f32.mxu1 %v315_v43  ;;  %1461 = vmatpush3.msra.mxu1 %v418_v42 }
  0xab   : > { %578 = vmatmul.mubr.f32.gmra.mxu0 %v312_v41  ;;  %1462 = vmatprep.subr.mxu1 %v417_v46 }
  0xac   : > { %792 = vmatprep.mubr.f32.mxu0 %v212_v44  ;;  %1463 = vmatpush3.msra.mxu1 %v417_v46 }
  0xad   : > { %723 = vmatmul.mubr.f32.gmra.mxu1 %v314_v45  ;;  %1464 = vmatprep.subr.mxu1 %v416_v48 }
  0xae   : > { %1465 = vmatpush3.msra.mxu1 %v416_v48  ;;  %1468 = vmatprep.mubr.f32.mxu1 %v213_v50 }
  0xaf   : > { %793 = vmatmul.mubr.f32.vlgmr.msra.gmra.mxu0 %v211_v47  ;;  %1466 = vmatprep.subr.mxu1 %v415_v51 }
  0xb0   : > { %797 = vmatprep.mubr.f32.mxu0 %v219_v49  ;;  %1467 = vmatpush3.msra.mxu1 %v415_v51 }
  0xb1   : > { %1469 = vmatmul.mubr.f32.vlgmr.msra.gmra.mxu1 %v220_v53 }
  0xb2   : > { %1471 = vmatprep.mubr.f32.mxu1 %v227_v55 }
  0xb3   : > { %798 = vmatmul.mubr.f32.gmra.mxu0 %v218_v52 }
  0xb4   : > { %802 = vmatprep.mubr.f32.mxu0 %v226_v54 }
  0xb5   : > { %1472 = vmatmul.mubr.f32.gmra.mxu1 %v234_v58 }
  0xb6   : > { %1474 = vmatprep.mubr.f32.mxu1 %v241_v59 }
  0xb7   : > { %803 = vmatmul.mubr.f32.gmra.mxu0 %v225_v56 }
  0xb8   : > { %807 = vmatprep.mubr.f32.mxu0 %v233_v57 }
  0xb9   : > { %1475 = vmatmul.mubr.f32.gmra.mxu1 %v248_v62 }
  0xba   : > { %1477 = vmatprep.mubr.f32.mxu1 %v255_v63 }
  0xbb   : > { %808 = vmatmul.mubr.f32.gmra.mxu0 %v232_v60 }
  0xbc   : > { %812 = vmatprep.mubr.f32.mxu0 %v240_v61 }
  0xbd   : > { %1478 = vmatmul.mubr.f32.gmra.mxu1 %v262_v2 }
  0xbe   : > { %1480 = vmatprep.mubr.f32.mxu1 %v269_v3 }
  0xbf   : > { %813 = vmatmul.mubr.f32.gmra.mxu0 %v239_v0 }
  0xc0   : > { %817 = vmatprep.mubr.f32.mxu0 %v247_v1 }
  0xc1   : > { %1481 = vmatmul.mubr.f32.gmra.mxu1 %v276_v6 }
  0xc2   : > { %1483 = vmatprep.mubr.f32.mxu1 %v283_v7 }
  0xc3   : > { %818 = vmatmul.mubr.f32.gmra.mxu0 %v246_v4 }
  0xc4   : > { %822 = vmatprep.mubr.f32.mxu0 %v254_v5 }
  0xc5   : > { %1484 = vmatmul.mubr.f32.gmra.mxu1 %v290_v10 }
  0xc6   : > { %1486 = vmatprep.mubr.f32.mxu1 %v297_v11 }
  0xc7   : > { %823 = vmatmul.mubr.f32.gmra.mxu0 %v253_v8 }
  0xc8   : > { %827 = vmatprep.mubr.f32.mxu0 %v261_v9 }
  0xc9   : > { %1487 = vmatmul.mubr.f32.gmra.mxu1 %v304_v14 }
  0xca   : > { %1489 = vmatprep.mubr.f32.mxu1 %v311_v15 }
  0xcb   : > { %828 = vmatmul.mubr.f32.gmra.mxu0 %v260_v12 }
  0xcc   : > { %832 = vmatprep.mubr.f32.mxu0 %v268_v13 }
  0xcd   : > { %1490 = vmatmul.mubr.f32.gmra.mxu1 %v318_v18 }
  0xcf   : > { %833 = vmatmul.mubr.f32.gmra.mxu0 %v267_v16 }
  0xd0   : > { %837 = vmatprep.mubr.f32.mxu0 %v275_v17 }
  0xd3   : > { %838 = vmatmul.mubr.f32.gmra.mxu0 %v274_v19 }
  0xd4   : > { %842 = vmatprep.mubr.f32.mxu0 %v282_v20 }
  0xd7   : > { %843 = vmatmul.mubr.f32.gmra.mxu0 %v281_v21 }
  0xd8   : > { %847 = vmatprep.mubr.f32.mxu0 %v289_v22 }
  0xdb   : > { %848 = vmatmul.mubr.f32.gmra.mxu0 %v288_v23 }
  0xdc   : > { %852 = vmatprep.mubr.f32.mxu0 %v296_v24 }
  0xdf   : > { %853 = vmatmul.mubr.f32.gmra.mxu0 %v295_v25 }
  0xe0   : > { %857 = vmatprep.mubr.f32.mxu0 %v303_v26 }
  0xe3   : > { %858 = vmatmul.mubr.f32.gmra.mxu0 %v302_v27 }
  0xe4   : > { %862 = vmatprep.mubr.f32.mxu0 %v310_v28  ;;  %v2062_v28 = vld [vmem:[%s2219_s2] ss:$0 sm:$0xff] }
  0xe7   : > { %863 = vmatmul.mubr.f32.gmra.mxu0 %v309_v29 }
  0xe8   : > { %867 = vmatprep.mubr.f32.mxu0 %v317_v30 }
  0xeb   : > { %868 = vmatmul.mubr.f32.gmra.mxu0 %v316_v31 }
 0x12e   : > { %v1196_v32 = vpop.f32.mrf.mxu0 }
 0x130   : > { %v1197_v33 = vpop.f32.mrf.mxu0 }
 0x131   : > { %v1953_v34 = vpop.f32.mrf.mxu1  ;;  %v1198_v26 = vadd.f32 %v1197_v33, %v1196_v32 }
 0x133   : > { %v1955_v35 = vpop.f32.mrf.mxu0  ;;  %v1277_v36 = vpop.f32.mrf.mxu1 }
 0x135   : > { %v1200_v37 = vpop.f32.mrf.mxu0  ;;  %v1957_v38 = vpop.f32.mrf.mxu1 }
 0x136   : > { %v1201_v32 = vadd.f32 %v1200_v37, %v1955_v35 }
 0x137   : > { %v1202_v39 = vpop.f32.mrf.mxu0  ;;  %v1959_v40 = vpop.f32.mrf.mxu1 }
 0x139   : > { %v1203_v41 = vpop.f32.mrf.mxu0  ;;  %v1961_v42 = vpop.f32.mrf.mxu1 }
 0x13b   : > { %v1963_v43 = vpop.f32.mrf.mxu0  ;;  %v1965_v44 = vpop.f32.mrf.mxu1 }
 0x13c   : > { %v1284_v35 = vadd.f32 %v1965_v44, %v1961_v42 }
 0x13d   : > { %v1967_v45 = vpop.f32.mrf.mxu0  ;;  %v1969_v46 = vpop.f32.mrf.mxu1 }
 0x13f   : > { %v1971_v47 = vpop.f32.mrf.mxu0  ;;  %v1973_v48 = vpop.f32.mrf.mxu1 }
 0x140   : > { %v1287_v44 = vadd.f32 %v1973_v48, %v1969_v46 }
 0x141   : > { %v1975_v49 = vpop.f32.mrf.mxu0  ;;  %v1977_v50 = vpop.f32.mrf.mxu1 }
 0x143   : > { %v1979_v51 = vpop.f32.mrf.mxu0  ;;  %v1981_v52 = vpop.f32.mrf.mxu1 }
 0x145   : > { %v1983_v53 = vpop.f32.mrf.mxu0  ;;  %v1985_v54 = vpop.f32.mrf.mxu1 }
 0x146   : > { %v1213_v46 = vadd.f32 %v1983_v53, %v1979_v51 }
 0x147   : > { %v1987_v55 = vpop.f32.mrf.mxu0  ;;  %v1989_v56 = vpop.f32.mrf.mxu1 }
 0x149   : > { %v1991_v57 = vpop.f32.mrf.mxu0  ;;  %v1993_v58 = vpop.f32.mrf.mxu1 }
 0x14b   : > { %v1995_v59 = vpop.f32.mrf.mxu0  ;;  %v1997_v60 = vpop.f32.mrf.mxu1 }
 0x14d   : > { %v1999_v61 = vpop.f32.mrf.mxu0  ;;  %v2001_v62 = vpop.f32.mrf.mxu1 }
 0x14f   : > { %v2003_v63 = vpop.f32.mrf.mxu0  ;;  %v2005_v0 = vpop.f32.mrf.mxu1 }
 0x151   : > { %v2007_v1 = vpop.f32.mrf.mxu0  ;;  %v2009_v2 = vpop.f32.mrf.mxu1 }
 0x153   : > { %v2011_v3 = vpop.f32.mrf.mxu0  ;;  %v2013_v4 = vpop.f32.mrf.mxu1 }
 0x155   : > { %v2015_v5 = vpop.f32.mrf.mxu0  ;;  %v2017_v6 = vpop.f32.mrf.mxu1 }
 0x157   : > { %v2019_v7 = vpop.f32.mrf.mxu0  ;;  %v2021_v8 = vpop.f32.mrf.mxu1 }
 0x159   : > { %v2023_v9 = vpop.f32.mrf.mxu0  ;;  %v2025_v10 = vpop.f32.mrf.mxu1 }
 0x15b   : > { %v2027_v11 = vpop.f32.mrf.mxu0  ;;  %v2029_v12 = vpop.f32.mrf.mxu1 }
 0x15d   : > { %v2031_v13 = vpop.f32.mrf.mxu0  ;;  %v2033_v14 = vpop.f32.mrf.mxu1 }
 0x15f   : > { %v2035_v15 = vpop.f32.mrf.mxu0  ;;  %v2037_v16 = vpop.f32.mrf.mxu1 }
 0x161   : > { %v2039_v17 = vpop.f32.mrf.mxu0  ;;  %v2041_v18 = vpop.f32.mrf.mxu1 }
 0x163   : > { %v2043_v19 = vpop.f32.mrf.mxu0  ;;  %v2045_v20 = vpop.f32.mrf.mxu1 }
 0x164   : > { %2236 = vst [vmem:[#allocation11_spill] sm:$0xff] %v2043_v19  ;;  %2237 = vst [vmem:[#allocation12_spill] sm:$0xff] %v2045_v20  ;;  %v510_v19 = vadd.f32 %v1201_v32, %v2062_v28 }
 0x165   : > { %v2047_v21 = vpop.f32.mrf.mxu0  ;;  %v2049_v22 = vpop.f32.mrf.mxu1 }
 0x166   : > { %2238 = vst [vmem:[#allocation13_spill] sm:$0xff] %v2047_v21  ;;  %2239 = vst [vmem:[#allocation14_spill] sm:$0xff] %v2049_v22  ;;  %v505_v22 = vadd.f32 %v1198_v26, %v2062_v28 }
 0x167   : > { %v2051_v23 = vpop.f32.mrf.mxu0  ;;  %v2053_v24 = vpop.f32.mrf.mxu1 }
 0x168   : > { %2240 = vst [vmem:[#allocation15_spill] sm:$0xff] %v2051_v23  ;;  %2241 = vst [vmem:[#allocation16_spill] sm:$0xff] %v2053_v24  ;;  %v1278_v24 = vadd.f32 %v1277_v36, %v1953_v34 }
 0x169   : > { %v2055_v25 = vpop.f32.mrf.mxu0  ;;  %v2057_v27 = vpop.f32.mrf.mxu1 }
 0x16a   : > { %2242 = vst [vmem:[#allocation17_spill] sm:$0xff] %v2055_v25  ;;  %2243 = vst [vmem:[#allocation18_spill] sm:$0xff] %v2057_v27  ;;  %v1204_v25 = vadd.f32 %v1203_v41, %v1202_v39  ;;  %v650_v21 = vadd.f32 %v1278_v24, %v505_v22  ;;  %v1207_v41 = vadd.f32 %v1967_v45, %v1963_v43 }
 0x16b   : > { %v2064_v29 = vpop.f32.mrf.mxu0  ;;  %v2066_v30 = vpop.f32.mrf.mxu1 }
 0x16c   : > { %2244 = vst [vmem:[#allocation19_spill] sm:$0xff] %v2064_v29  ;;  %2245 = vst [vmem:[#allocation20_spill] sm:$0xff] %v2066_v30  ;;  %v1281_v29 = vadd.f32 %v1959_v40, %v1957_v38  ;;  %v515_v36 = vadd.f32 %v1204_v25, %v2062_v28  ;;  %v520_v42 = vadd.f32 %v1207_v41, %v2062_v28 }
 0x16d   : > { %v2068_v31 = vpop.f32.mrf.mxu0  ;;  %v2073_v33 = vpop.f32.mrf.mxu1 }
 0x16e   : > { %2246 = vst [vmem:[#allocation21_spill] sm:$0xff] %v2068_v31  ;;  %v655_v39 = vadd.f32 %v1281_v29, %v510_v19 }
 0x16f   : > { %v1356_v27 = vpop.f32.mrf.mxu0  ;;  %v2078_v30 = vpop.f32.mrf.mxu1 }
 0x171   : > { %v1357_v23 = vpop.f32.mrf.mxu0  ;;  %v1470_v20 = vpop.f32.mrf.mxu1 }
 0x172   : > { %v1358_v31 = vadd.f32 %v1357_v23, %v1356_v27  ;;  %v660_v27 = vadd.f32 %v1284_v35, %v515_v36  ;;  %v665_v35 = vadd.f32 %v1287_v44, %v520_v42  ;;  %v1296_v42 = vadd.f32 %v1997_v60, %v1993_v58 }
 0x173   : > { %v1359_v26 = vpop.f32.mrf.mxu0  ;;  %v939_v24 = vpop.f32.mrf.mxu1  ;;  %v1219_v44 = vadd.f32 %v1999_v61, %v1995_v59  ;;  %v1299_v60 = vadd.f32 %v2005_v0, %v2001_v62 }
 0x174   : > { %v795_v34 = vadd.f32 %v1358_v31, %v650_v21  ;;  %v1210_v21 = vadd.f32 %v1975_v49, %v1971_v47  ;;  %v1290_v49 = vadd.f32 %v1981_v52, %v1977_v50  ;;  %v530_v50 = vadd.f32 %v1213_v46, %v2062_v28 }
 0x175   : > { %v1360_v37 = vpop.f32.mrf.mxu0  ;;  %v1473_v23 = vpop.f32.mrf.mxu1  ;;  %v1293_v52 = vadd.f32 %v1989_v56, %v1985_v54  ;;  %v540_v58 = vadd.f32 %v1219_v44, %v2062_v28  ;;  %v1234_v44 = vadd.f32 %v2039_v17, %v2035_v15 }
 0x176   : > { %v1361_v22 = vadd.f32 %v1360_v37, %v1359_v26  ;;  %v940_v38 = vadd.f32 %v939_v24, %v795_v34  ;;  %v525_v47 = vadd.f32 %v1210_v21, %v2062_v28 }
 0x177   : > { %v1362_v40 = vpop.f32.mrf.mxu0  ;;  %v949_v45 = vpop.f32.mrf.mxu1 }
 0x178   : > { %v800_v32 = vadd.f32 %v1361_v22, %v655_v39  ;;  %v1018_v25 = vmax.f32 %v940_v38, 0.0  ;;  %v670_v24 = vadd.f32 %v1290_v49, %v525_v47  ;;  %v1216_v38 = vadd.f32 %v1991_v57, %v1987_v55 }
 0x179   : > { %v1363_v31 = vpop.f32.mrf.mxu0  ;;  %v1476_v39 = vpop.f32.mrf.mxu1  ;;  %v675_v57 = vadd.f32 %v1293_v52, %v530_v50 }
 0x17a   : > { %v945_v19 = vadd.f32 %v1470_v20, %v800_v32  ;;  %v1364_v29 = vadd.f32 %v1363_v31, %v1362_v40  ;;  %1034 = vst [vmem:[%s2091_s21] sm:$0xff] %v1018_v25  ;;  %v535_v31 = vadd.f32 %v1216_v38, %v2062_v28  ;;  %v1228_v38 = vadd.f32 %v2023_v9, %v2019_v7 }
 0x17b   : > { %v1365_v43 = vpop.f32.mrf.mxu0 }
 0x17c   : > { %v1019_v26 = vmax.f32 %v945_v19, 0.0  ;;  %v805_v34 = vadd.f32 %v1364_v29, %v660_v27  ;;  %v959_v27 = vpop.f32.mrf.mxu1 }
 0x17d   : > { %v1366_v36 = vpop.f32.mrf.mxu0 }
 0x17e   : > { %1035 = vst [vmem:[%s2091_s21 + $0x8] sm:$0xff] %v1019_v26  ;;  %v1367_v48 = vadd.f32 %v1366_v36, %v1365_v43  ;;  %v950_v20 = vadd.f32 %v949_v45, %v805_v34  ;;  %v1479_v19 = vpop.f32.mrf.mxu1  ;;  %v680_v45 = vadd.f32 %v1296_v42, %v535_v31  ;;  %v1222_v26 = vadd.f32 %v2007_v1, %v2003_v63 }
 0x17f   : > { %v1368_v37 = vpop.f32.mrf.mxu0  ;;  %v685_v1 = vadd.f32 %v1299_v60, %v540_v58  ;;  %v2249_v58 = vld [vmem:[#allocation13_spill] sm:$0xff] }
 0x180   : > { %v810_v41 = vadd.f32 %v1367_v48, %v665_v35  ;;  %v1020_v22 = vmax.f32 %v950_v20, 0.0  ;;  %v969_v49 = vpop.f32.mrf.mxu1  ;;  %v545_v46 = vadd.f32 %v1222_v26, %v2062_v28  ;;  %v1302_v48 = vadd.f32 %v2013_v4, %v2009_v2 }
 0x181   : > { %v1369_v40 = vpop.f32.mrf.mxu0  ;;  %v1225_v20 = vadd.f32 %v2015_v5, %v2011_v3  ;;  %v1305_v4 = vadd.f32 %v2021_v8, %v2017_v6 }
 0x182   : > { %v955_v32 = vadd.f32 %v1473_v23, %v810_v41  ;;  %1036 = vst [vmem:[%s2091_s21 + $0x10] sm:$0xff] %v1020_v22  ;;  %v1370_v51 = vadd.f32 %v1369_v40, %v1368_v37 }
 0x183   : > { %v1371_v53 = vpop.f32.mrf.mxu0  ;;  %v550_v2 = vadd.f32 %v1225_v20, %v2062_v28  ;;  %v2253_v20 = vld [vmem:[#allocation16_spill] sm:$0xff] }
 0x184   : > { %v1021_v21 = vmax.f32 %v955_v32, 0.0  ;;  %v815_v25 = vadd.f32 %v1370_v51, %v670_v24  ;;  %v690_v24 = vadd.f32 %v1302_v48, %v545_v46  ;;  %v2251_v46 = vld [vmem:[#allocation17_spill] sm:$0xff] }
 0x185   : > { %v1372_v55 = vpop.f32.mrf.mxu0  ;;  %v695_v9 = vadd.f32 %v1305_v4, %v550_v2  ;;  %v2255_v2 = vld [vmem:[#allocation20_spill] sm:$0xff] }
 0x186   : > { %1037 = vst [vmem:[%s2091_s21 + $0x18] sm:$0xff] %v1021_v21  ;;  %v1373_v54 = vadd.f32 %v1372_v55, %v1371_v53  ;;  %v960_v56 = vadd.f32 %v959_v27, %v815_v25  ;;  %v555_v53 = vadd.f32 %v1228_v38, %v2062_v28  ;;  %v1308_v27 = vadd.f32 %v2029_v12, %v2025_v10 }
 0x187   : > { %v1374_v23 = vpop.f32.mrf.mxu0  ;;  %v1231_v21 = vadd.f32 %v2031_v13, %v2027_v11  ;;  %v1311_v12 = vadd.f32 %v2037_v16, %v2033_v14 }
 0x188   : > { %v820_v29 = vadd.f32 %v1373_v54, %v675_v57  ;;  %v1022_v43 = vmax.f32 %v960_v56, 0.0  ;;  %v700_v57 = vadd.f32 %v1308_v27, %v555_v53 }
 0x189   : > { %v1375_v34 = vpop.f32.mrf.mxu0  ;;  %v560_v10 = vadd.f32 %v1231_v21, %v2062_v28 }
 0x18a   : > { %v965_v47 = vadd.f32 %v1476_v39, %v820_v29  ;;  %1038 = vst [vmem:[%s2091_s21 + $0x20] sm:$0xff] %v1022_v43  ;;  %v1376_v59 = vadd.f32 %v1375_v34, %v1374_v23  ;;  %v1482_v39 = vpop.f32.mrf.mxu1  ;;  %v565_v43 = vadd.f32 %v1234_v44, %v2062_v28  ;;  %v2248_v34 = vld [vmem:[#allocation11_spill] sm:$0xff] }
 0x18b   : > { %v1377_v61 = vpop.f32.mrf.mxu0  ;;  %v705_v17 = vadd.f32 %v1311_v12, %v560_v10  ;;  %v1237_v60 = vadd.f32 %v2249_v58, %v2248_v34 }
 0x18c   : > { %v1023_v36 = vmax.f32 %v965_v47, 0.0  ;;  %v825_v35 = vadd.f32 %v1376_v59, %v680_v45  ;;  %v979_v52 = vpop.f32.mrf.mxu1  ;;  %v2247_v45 = vld [vmem:[#allocation12_spill] sm:$0xff] }
 0x18d   : > { %v1378_v63 = vpop.f32.mrf.mxu0  ;;  %v1314_v26 = vadd.f32 %v2247_v45, %v2041_v18  ;;  %v570_v18 = vadd.f32 %v1237_v60, %v2062_v28 }
 0x18e   : > { %1039 = vst [vmem:[%s2091_s21 + $0x28] sm:$0xff] %v1023_v36  ;;  %v1379_v62 = vadd.f32 %v1378_v63, %v1377_v61  ;;  %v970_v0 = vadd.f32 %v969_v49, %v825_v35  ;;  %v1485_v31 = vpop.f32.mrf.mxu1  ;;  %v2250_v35 = vld [vmem:[#allocation15_spill] sm:$0xff] }
 0x18f   : > { %v1380_v37 = vpop.f32.mrf.mxu0  ;;  %v710_v36 = vadd.f32 %v1314_v26, %v565_v43  ;;  %v1240_v48 = vadd.f32 %v2251_v46, %v2250_v35 }
 0x190   : > { %v830_v41 = vadd.f32 %v1379_v62, %v685_v1  ;;  %v1024_v22 = vmax.f32 %v970_v0, 0.0  ;;  %v989_v23 = vpop.f32.mrf.mxu1  ;;  %v2252_v1 = vld [vmem:[#allocation14_spill] sm:$0xff] }
 0x191   : > { %v1381_v40 = vpop.f32.mrf.mxu0  ;;  %v1317_v62 = vadd.f32 %v2253_v20, %v2252_v1  ;;  %v575_v38 = vadd.f32 %v1240_v48, %v2062_v28 }
 0x192   : > { %v975_v50 = vadd.f32 %v1479_v19, %v830_v41  ;;  %1040 = vst [vmem:[%s2091_s21 + $0x30] sm:$0xff] %v1024_v22  ;;  %v1382_v3 = vadd.f32 %v1381_v40, %v1380_v37  ;;  %v1488_v59 = vpop.f32.mrf.mxu1  ;;  %v2254_v40 = vld [vmem:[#allocation18_spill] sm:$0xff] }
 0x193   : > { %v1383_v5 = vpop.f32.mrf.mxu0  ;;  %v1320_v4 = vadd.f32 %v2255_v2, %v2254_v40 }
 0x194   : > { %v1025_v32 = vmax.f32 %v975_v50, 0.0  ;;  %v835_v51 = vadd.f32 %v1382_v3, %v690_v24  ;;  %v999_v41 = vpop.f32.mrf.mxu1  ;;  %v715_v3 = vadd.f32 %v1317_v62, %v570_v18 }
 0x195   : > { %v1384_v7 = vpop.f32.mrf.mxu0 }
 0x196   : > { %1041 = vst [vmem:[%s2091_s21 + $0x38] sm:$0xff] %v1025_v32  ;;  %v1385_v6 = vadd.f32 %v1384_v7, %v1383_v5  ;;  %v980_v8 = vadd.f32 %v979_v52, %v835_v51  ;;  %v2256_v5 = vld [vmem:[#allocation19_spill] sm:$0xff]  ;;  %v2257_v52 = vld [vmem:[#allocation21_spill] sm:$0xff]  ;;  %v1491_v7 = vpop.f32.mrf.mxu1 }
 0x197   : > { %v1386_v25 = vpop.f32.mrf.mxu0  ;;  %v1243_v32 = vadd.f32 %v2257_v52, %v2256_v5 }
 0x198   : > { %v840_v42 = vadd.f32 %v1385_v6, %v695_v9  ;;  %v1026_v55 = vmax.f32 %v980_v8, 0.0  ;;  %v720_v6 = vadd.f32 %v1320_v4, %v575_v38  ;;  %v1009_v44 = vpop.f32.mrf.mxu1 }
 0x199   : > { %v1387_v54 = vpop.f32.mrf.mxu0 }
 0x19a   : > { %v985_v56 = vadd.f32 %v1482_v39, %v840_v42  ;;  %1042 = vst [vmem:[%s2091_s21 + $0x40] sm:$0xff] %v1026_v55  ;;  %v1388_v11 = vadd.f32 %v1387_v54, %v1386_v25  ;;  %v580_v25 = vadd.f32 %v1243_v32, %v2062_v28 }
 0x19b   : > { %v1389_v13 = vpop.f32.mrf.mxu0 }
 0x19c   : > { %v1027_v19 = vmax.f32 %v985_v56, 0.0  ;;  %v845_v29 = vadd.f32 %v1388_v11, %v700_v57 }
 0x19d   : > { %v1390_v15 = vpop.f32.mrf.mxu0 }
 0x19e   : > { %1043 = vst [vmem:[%s2091_s21 + $0x48] sm:$0xff] %v1027_v19  ;;  %v1391_v14 = vadd.f32 %v1390_v15, %v1389_v13  ;;  %v990_v16 = vadd.f32 %v989_v23, %v845_v29 }
 0x19f   : > { %v1392_v47 = vpop.f32.mrf.mxu0 }
 0x1a0   : > { %v850_v61 = vadd.f32 %v1391_v14, %v705_v17  ;;  %v1028_v49 = vmax.f32 %v990_v16, 0.0 }
 0x1a1   : > { %v1393_v63 = vpop.f32.mrf.mxu0 }
 0x1a2   : > { %v995_v0 = vadd.f32 %v1485_v31, %v850_v61  ;;  %1044 = vst [vmem:[%s2091_s21 + $0x50] sm:$0xff] %v1028_v49  ;;  %v1394_v37 = vadd.f32 %v1393_v63, %v1392_v47  ;;  %v1323_v31 = vadd.f32 %v2078_v30, %v2073_v33 }
 0x1a3   : > { %v1395_v39 = vpop.f32.mrf.mxu0 }
 0x1a4   : > { %v1029_v22 = vmax.f32 %v995_v0, 0.0  ;;  %v855_v24 = vadd.f32 %v1394_v37, %v710_v36  ;;  %v725_v56 = vadd.f32 %v1323_v31, %v580_v25 }
 0x1a5   : > { %v1396_v50 = vpop.f32.mrf.mxu0 }
 0x1a6   : > { %1045 = vst [vmem:[%s2091_s21 + $0x58] sm:$0xff] %v1029_v22  ;;  %v1397_v51 = vadd.f32 %v1396_v50, %v1395_v39  ;;  %v1000_v53 = vadd.f32 %v999_v41, %v855_v24 }
 0x1a7   : > { %v1398_v27 = vpop.f32.mrf.mxu0 }
 0x1a8   : > { %v860_v9 = vadd.f32 %v1397_v51, %v715_v3  ;;  %v1030_v21 = vmax.f32 %v1000_v53, 0.0 }
 0x1a9   : > { %v1399_v8 = vpop.f32.mrf.mxu0 }
 0x1aa   : > { %v1005_v42 = vadd.f32 %v1488_v59, %v860_v9  ;;  %1046 = vst [vmem:[%s2091_s21 + $0x60] sm:$0xff] %v1030_v21  ;;  %v1400_v55 = vadd.f32 %v1399_v8, %v1398_v27 }
 0x1ab   : > { %v1401_v57 = vpop.f32.mrf.mxu0 }
 0x1ac   : > { %v1031_v54 = vmax.f32 %v1005_v42, 0.0  ;;  %v865_v10 = vadd.f32 %v1400_v55, %v720_v6 }
 0x1ad   : > { %v1402_v12 = vpop.f32.mrf.mxu0 }
 0x1ae   : > { %1047 = vst [vmem:[%s2091_s21 + $0x68] sm:$0xff] %v1031_v54  ;;  %v1403_v28 = vadd.f32 %v1402_v12, %v1401_v57  ;;  %v1010_v11 = vadd.f32 %v1009_v44, %v865_v10 }
 0x1b0   : > { %v870_v13 = vadd.f32 %v1403_v28, %v725_v56  ;;  %v1032_v23 = vmax.f32 %v1010_v11, 0.0 }
 0x1b2   : > { %v1015_v30 = vadd.f32 %v1491_v7, %v870_v13  ;;  %1048 = vst [vmem:[%s2091_s21 + $0x70] sm:$0xff] %v1032_v23 }
 0x1b4   : > { %v1033_v33 = vmax.f32 %v1015_v30, 0.0 }
 0x1b6   : > { %1049 = vst [vmem:[%s2091_s21 + $0x78] sm:$0xff] %v1033_v33 }
 0x1b7   : > { %1625 = shalt.err (!%p1622_p0)
}
 0x1b8   : > { %s1626_s22 = scalar_lea.hbm %s2171_s7, 2048  ;;  %s1630_s29 = scalar_lea.hbm %s2220_s3, 4096 }
 0x1b9   : > { %p1627_p5 = scmp.ne.s32.totalorder %s2171_s7, %s1626_s22  ;;  %p1631_p4 = scmp.lt.s32.totalorder %s2171_s7, %s2220_s3 }
 0x1ba   : > { %p1632_p6 = scmp.lt.s32.totalorder %s1630_s29, %s1626_s22 }
 0x1bb   : > { %p1628_p9 = pnand %p1627_p5, %p2258_p11 }
 0x1bc   : > { %p1633_p8 = por %p1632_p6, %p1631_p4 }
 0x1bd   : > { %p1629_p1 = pneg %p1628_p9 }
 0x1bf   : > { %p1634_p3 = pnand %p1633_p8, %p1629_p1 }
 0x1c1   : > { %1637 = shalt.err (!%p1634_p3)
}
 0x1c2   : > { %s1689_s17 = smov 128   ;;  %s1690_s21 = smov 8  }
 0x1c3   : > { %1501 = dma.vmem_to_hbm [thread:$0]  (%p2258_p11), %s2173_s25, 2048, %s2171_s7, %s1051_s8, %s1689_s17, %s1689_s17, %s1690_s21  }
 0x1c4 PF: > { %s1079_s23 = sand.u32 1, %s1668_s12   ;;  %p2259_p7 = scmp.ne.s32.totalorder %s2226_s19, 0 }
 0x1c5   : > { %p2260_p12 = scmp.ge.s32.totalorder %s1680_s15, 2  ;;  %s1080_s30 = scalar_lea.sflag [#allocation4], %s1079_s23 }
 0x1c7   : > { %p1512_p10 = pnand %p2260_p12, %p2259_p7 }
 0x1c9   : > { %p1513_p2 = pneg %p1512_p10 }
 0x1cb   : > { %1663 = dma.done.wait (%p1513_p2), %s1080_s30, 2048  }
 0x1cc   : > { %1665 = vsyncadd (%p1513_p2), %s1080_s30, 4294965248  ;;  %p17_p13 = scmp.ge.s32.totalorder %s1765_s24, 4   ;;  %s2261_s12 = smov %s1672_s13 }
 0x1cd   : > { %s2262_s13 = smov %s1676_s14  ;;  %s2263_s14 = smov %s1782_s5 }
 0x1ce   : > { %s2264_s15 = smov %s1765_s24  ;;  %19 = sbr.rel (!%p17_p13) target bundleno = 6 (0x6), region = 81 }
 0x1d3   :  { %1085 = vsyncpa [#allocation3], 1 }
 0x1d4   :  { %1087 = vsyncpa [#allocation3 + $0x1], 1 }
 0x1d5   :  { %1088 = vsyncpa [#allocation6], 1 }
 0x1d6   :  { %1089 = vsyncpa [#allocation4], 1 }
 0x1d7   :  { %1091 = vsyncpa [#allocation4 + $0x1], 1 }

</bundles_post_ra>
